<compile_context>
chip_gen: v7x
topology: tpu7x:2x2x1
jax: 0.10.0
libtpu: 0.0.40
codegen_flags: <defaults>
</compile_context>

<pallas_src>
import functools

import jax
import jax.numpy as jnp
from jax.experimental import pallas as pl
from jax.experimental.pallas import tpu as pltpu


def _f1_partials_kernel(logits_ref, labels_ref, tp_ref, sp_ref, sy_ref):
    """Accumulate per-class partials (tp, sum_p, sum_y) for one batch tile.

    logits_ref: (C, TILE_N)  classes on sublanes, batch rows on lanes.
    labels_ref: (1, TILE_N)  int32 labels (padded rows hold the value C).
    tp/sp/sy_ref: (C, 1)     resident output accumulators for this split.
    """
    t = pl.program_id(1)

    @pl.when(t == 0)
    def _init():
        tp_ref[...] = jnp.zeros_like(tp_ref)
        sp_ref[...] = jnp.zeros_like(sp_ref)
        sy_ref[...] = jnp.zeros_like(sy_ref)

    # Softmax over the class (sublane) axis.
    x = logits_ref[...].astype(jnp.float32)            # (C, TILE_N)
    m = jnp.max(x, axis=0, keepdims=True)              # (1, TILE_N)
    e = jnp.exp(x - m)                                  # (C, TILE_N)  EUP
    s = jnp.sum(e, axis=0, keepdims=True)               # (1, TILE_N)
    p = e / s                                            # exact divide (parity)

    # One-hot(y_true)^T built in-kernel: class iota along sublanes vs labels.
    lab = labels_ref[...]                                # (1, TILE_N) int32
    cls = jax.lax.broadcasted_iota(jnp.int32, x.shape, 0)
    y = (cls == lab).astype(jnp.float32)                 # (C, TILE_N)
    # Padded rows (label == C) match no class -> y == 0 there.

    # Per-class partial reductions over this batch tile (lane-axis reduce).
    tp_ref[...] += jnp.sum(y * p, axis=1, keepdims=True)   # (C, 1)
    sp_ref[...] += jnp.sum(p, axis=1, keepdims=True)        # (C, 1) = tp + fp (+ pad mass)
    sy_ref[...] += jnp.sum(y, axis=1, keepdims=True)         # (C, 1) = tp + fn


def _round_up(x, m):
    return ((x + m - 1) // m) * m


def f1_loss(y_pred, y_true, *, classes=3, epsilon=1e-7,
            tile_n=65536, num_splits=2):
    """Pallas equivalent of F1Loss.forward(y_pred, y_true)."""
    assert y_pred.ndim == 2
    assert y_true.ndim == 1
    n, c = y_pred.shape
    assert c == classes
    assert y_true.shape[0] == n

    # --- tiling / split geometry (all static Python ints) -------------------
    num_splits = max(1, int(num_splits))
    tile_n = int(tile_n)
    # Don't let the tile be absurdly larger than the (per-split) batch.
    tile_n = min(tile_n, max(128, _round_up(pl.cdiv(n, num_splits), 128)))
    tile_n = _round_up(tile_n, 128)                 # lane-aligned
    n_tiles = pl.cdiv(n, tile_n)
    n_splits = max(1, min(num_splits, n_tiles))
    tiles_per_split = pl.cdiv(n_tiles, n_splits)
    n_padded = n_splits * tiles_per_split * tile_n
    n_pad = n_padded - n

    # --- lane-dense repack (batch -> lanes, classes -> sublanes) -------------
    # Padded rows: logits = 0 (softmax -> 1/C, removed analytically below),
    # label = C (out of range -> one-hot row of zeros).
    logits_t = jnp.pad(y_pred, ((0, n_pad), (0, 0))).T                 # (C, n_padded), native dtype
    labels_t = jnp.pad(y_true.astype(jnp.int32), (0, n_pad),
                       constant_values=c).reshape(1, n_padded)          # (1, n_padded)

    out_struct = jax.ShapeDtypeStruct((n_splits, c, 1), jnp.float32)

    tp, sp, sy = pl.pallas_call(
        _f1_partials_kernel,
        out_shape=(out_struct, out_struct, out_struct),
        grid=(n_splits, tiles_per_split),
        in_specs=[
            pl.BlockSpec((c, tile_n), lambda s, t: (0, s * tiles_per_split + t)),
            pl.BlockSpec((1, tile_n), lambda s, t: (0, s * tiles_per_split + t)),
        ],
        out_specs=(
            pl.BlockSpec((None, c, 1), lambda s, t: (s, 0, 0)),
            pl.BlockSpec((None, c, 1), lambda s, t: (s, 0, 0)),
            pl.BlockSpec((None, c, 1), lambda s, t: (s, 0, 0)),
        ),
        compiler_params=pltpu.CompilerParams(
            dimension_semantics=("parallel", "arbitrary"),
            vmem_limit_bytes=48 * 1024 * 1024,
        ),
    )(logits_t, labels_t)

    # --- tiny finalize in plain JAX ------------------------------------------
    tp = jnp.sum(tp[:, :, 0], axis=0)                                  # (C,)
    sum_p = jnp.sum(sp[:, :, 0], axis=0) - (n_pad / c)                 # remove pad softmax mass
    sum_y = jnp.sum(sy[:, :, 0], axis=0)

    eps = jnp.float32(epsilon)
    precision = tp / (sum_p + eps)     # tp / (tp + fp + eps)
    recall = tp / (sum_y + eps)        # tp / (tp + fn + eps)
    f1 = 2.0 * precision * recall / (precision + recall + eps)
    f1 = jnp.clip(f1, eps, 1.0 - eps)
    return 1.0 - jnp.mean(f1)


def _f1_loss_ref(y_pred, y_true, *, classes=3, epsilon=1e-7):
    y_true_oh = jax.nn.one_hot(y_true, classes, dtype=jnp.float32)
    p = jax.nn.softmax(y_pred.astype(jnp.float32), axis=1)
    tp = (y_true_oh * p).sum(axis=0)
    fp = ((1 - y_true_oh) * p).sum(axis=0)
    fn = (y_true_oh * (1 - p)).sum(axis=0)
    precision = tp / (tp + fp + epsilon)
    recall = tp / (tp + fn + epsilon)
    f1 = 2 * (precision * recall) / (precision + recall + epsilon)
    f1 = jnp.clip(f1, epsilon, 1 - epsilon)
    return 1 - f1.mean()


if __name__ == "__main__":
    key = jax.random.PRNGKey(0)
    k1, k2 = jax.random.split(key)
    N, C = 300, 3
    y_pred = jax.random.normal(k1, (N, C), dtype=jnp.float32)
    y_true = jax.random.randint(k2, (N,), 0, C, dtype=jnp.int32)

    # tile_n=128 / num_splits=2 exercises: multi-tile accumulation within a
    # split, the parallel split axis, and the padded-rows correction.
    loss_fn = jax.jit(functools.partial(
        f1_loss, classes=C, epsilon=1e-7, tile_n=128, num_splits=2))
    loss = loss_fn(y_pred, y_true)
    loss = jax.block_until_ready(loss)

    ref = _f1_loss_ref(y_pred, y_true, classes=C, epsilon=1e-7)
    assert jnp.isfinite(loss), loss
    assert jnp.allclose(loss, ref, atol=1e-4, rtol=1e-4), (loss, ref)
    print("KERNEL_OK")
</pallas_src>

<mosaic_0001>
module attributes {stable_mosaic.version = 11 : i64} {
  func.func @_f1_partials_kernel(%arg0: i32, %arg1: i32, %arg2: memref<3x128xf32, #tpu.memory_space<vmem>>, %arg3: memref<1x128xi32, #tpu.memory_space<vmem>>, %arg4: memref<1x3x1xf32, #tpu.memory_space<vmem>>, %arg5: memref<1x3x1xf32, #tpu.memory_space<vmem>>, %arg6: memref<1x3x1xf32, #tpu.memory_space<vmem>>) attributes {dimension_semantics = [#tpu.dimension_semantics<parallel>, #tpu.dimension_semantics<arbitrary>], iteration_bounds = array<i64: 2, 2>, scalar_prefetch = 0 : i64, scratch_operands = 0 : i64, tpu.core_type = #tpu.core_type<tc>, window_params = [{transform_indices = @transform_0, window_bounds = array<i64: 3, 128>}, {transform_indices = @transform_1, window_bounds = array<i64: 1, 128>}, {transform_indices = @transform_2, window_bounds = array<i64: 1, 3, 1>}, {transform_indices = @transform_3, window_bounds = array<i64: 1, 3, 1>}, {transform_indices = @transform_4, window_bounds = array<i64: 1, 3, 1>}]} {
    %c0_i32 = arith.constant 0 : i32
    %0 = arith.cmpi eq, %arg1, %c0_i32 : i32
    %1 = arith.extui %0 : i1 to i32
    %c0_i32_0 = arith.constant 0 : i32
    %2 = arith.cmpi ne, %1, %c0_i32_0 : i32
    scf.if %2 {
      %cst_26 = arith.constant 0.000000e+00 : f32
      %44 = vector.broadcast %cst_26 : f32 to vector<3x1xf32>
      %c0_27 = arith.constant 0 : index
      %c0_28 = arith.constant 0 : index
      %c0_29 = arith.constant 0 : index
      %45 = vector.load %arg4[%c0_27, %c0_28, %c0_29] : memref<1x3x1xf32, #tpu.memory_space<vmem>>, vector<1x3x1xf32>
      %46 = vector.shape_cast %45 : vector<1x3x1xf32> to vector<3x1xf32>
      %47 = vector.shape_cast %44 : vector<3x1xf32> to vector<1x3x1xf32>
      tpu.vector_store %arg4[%c0_27, %c0_28, %c0_29], %47 {strides = array<i32>} : memref<1x3x1xf32, #tpu.memory_space<vmem>>, vector<1x3x1xf32>,
      %cst_30 = arith.constant 0.000000e+00 : f32
      %48 = vector.broadcast %cst_30 : f32 to vector<3x1xf32>
      %c0_31 = arith.constant 0 : index
      %c0_32 = arith.constant 0 : index
      %c0_33 = arith.constant 0 : index
      %49 = vector.load %arg5[%c0_31, %c0_32, %c0_33] : memref<1x3x1xf32, #tpu.memory_space<vmem>>, vector<1x3x1xf32>
      %50 = vector.shape_cast %49 : vector<1x3x1xf32> to vector<3x1xf32>
      %51 = vector.shape_cast %48 : vector<3x1xf32> to vector<1x3x1xf32>
      tpu.vector_store %arg5[%c0_31, %c0_32, %c0_33], %51 {strides = array<i32>} : memref<1x3x1xf32, #tpu.memory_space<vmem>>, vector<1x3x1xf32>,
      %cst_34 = arith.constant 0.000000e+00 : f32
      %52 = vector.broadcast %cst_34 : f32 to vector<3x1xf32>
      %c0_35 = arith.constant 0 : index
      %c0_36 = arith.constant 0 : index
      %c0_37 = arith.constant 0 : index
      %53 = vector.load %arg6[%c0_35, %c0_36, %c0_37] : memref<1x3x1xf32, #tpu.memory_space<vmem>>, vector<1x3x1xf32>
      %54 = vector.shape_cast %53 : vector<1x3x1xf32> to vector<3x1xf32>
      %55 = vector.shape_cast %52 : vector<3x1xf32> to vector<1x3x1xf32>
      tpu.vector_store %arg6[%c0_35, %c0_36, %c0_37], %55 {strides = array<i32>} : memref<1x3x1xf32, #tpu.memory_space<vmem>>, vector<1x3x1xf32>,
    } else {
    }
    %c0 = arith.constant 0 : index
    %c0_1 = arith.constant 0 : index
    %3 = vector.load %arg2[%c0, %c0_1] : memref<3x128xf32, #tpu.memory_space<vmem>>, vector<3x128xf32>
    %cst = arith.constant dense<0xFF800000> : vector<128xf32>
    %4 = vector.multi_reduction <maximumf>, %3, %cst [0] : vector<3x128xf32> to vector<128xf32>
    %5 = vector.shape_cast %4 : vector<128xf32> to vector<1x128xf32>
    %6 = vector.broadcast %5 : vector<1x128xf32> to vector<3x128xf32>
    %7 = arith.subf %3, %6 : vector<3x128xf32>
    %8 = math.exp %7 : vector<3x128xf32>
    %cst_2 = arith.constant dense<0.000000e+00> : vector<128xf32>
    %9 = vector.multi_reduction <add>, %8, %cst_2 [0] : vector<3x128xf32> to vector<128xf32>
    %10 = vector.shape_cast %9 : vector<128xf32> to vector<1x128xf32>
    %11 = vector.broadcast %10 : vector<1x128xf32> to vector<3x128xf32>
    %12 = arith.divf %8, %11 : vector<3x128xf32>
    %c0_3 = arith.constant 0 : index
    %c0_4 = arith.constant 0 : index
    %13 = vector.load %arg3[%c0_3, %c0_4] : memref<1x128xi32, #tpu.memory_space<vmem>>, vector<1x128xi32>
    %14 = tpu.iota {dimensions = array<i32: 0>} : vector<3x128xi32>
    %15 = vector.broadcast %13 : vector<1x128xi32> to vector<3x128xi32>
    %16 = arith.cmpi eq, %14, %15 : vector<3x128xi32>
    %17 = arith.extui %16 : vector<3x128xi1> to vector<3x128xi32>
    %18 = arith.sitofp %17 : vector<3x128xi32> to vector<3x128xf32>
    %c0_5 = arith.constant 0 : index
    %c0_6 = arith.constant 0 : index
    %c0_7 = arith.constant 0 : index
    %19 = vector.load %arg4[%c0_5, %c0_6, %c0_7] : memref<1x3x1xf32, #tpu.memory_space<vmem>>, vector<1x3x1xf32>
    %20 = vector.shape_cast %19 : vector<1x3x1xf32> to vector<3x1xf32>
    %21 = arith.mulf %18, %12 : vector<3x128xf32>
    %cst_8 = arith.constant dense<0.000000e+00> : vector<3xf32>
    %22 = vector.multi_reduction <add>, %21, %cst_8 [1] : vector<3x128xf32> to vector<3xf32>
    %23 = vector.shape_cast %22 : vector<3xf32> to vector<3x1xf32>
    %24 = arith.addf %20, %23 : vector<3x1xf32>
    %c0_9 = arith.constant 0 : index
    %c0_10 = arith.constant 0 : index
    %c0_11 = arith.constant 0 : index
    %25 = vector.load %arg4[%c0_9, %c0_10, %c0_11] : memref<1x3x1xf32, #tpu.memory_space<vmem>>, vector<1x3x1xf32>
    %26 = vector.shape_cast %25 : vector<1x3x1xf32> to vector<3x1xf32>
    %27 = vector.shape_cast %24 : vector<3x1xf32> to vector<1x3x1xf32>
    tpu.vector_store %arg4[%c0_9, %c0_10, %c0_11], %27 {strides = array<i32>} : memref<1x3x1xf32, #tpu.memory_space<vmem>>, vector<1x3x1xf32>,
    %c0_12 = arith.constant 0 : index
    %c0_13 = arith.constant 0 : index
    %c0_14 = arith.constant 0 : index
    %28 = vector.load %arg5[%c0_12, %c0_13, %c0_14] : memref<1x3x1xf32, #tpu.memory_space<vmem>>, vector<1x3x1xf32>
    %29 = vector.shape_cast %28 : vector<1x3x1xf32> to vector<3x1xf32>
    %cst_15 = arith.constant dense<0.000000e+00> : vector<3xf32>
    %30 = vector.multi_reduction <add>, %12, %cst_15 [1] : vector<3x128xf32> to vector<3xf32>
    %31 = vector.shape_cast %30 : vector<3xf32> to vector<3x1xf32>
    %32 = arith.addf %29, %31 : vector<3x1xf32>
    %c0_16 = arith.constant 0 : index
    %c0_17 = arith.constant 0 : index
    %c0_18 = arith.constant 0 : index
    %33 = vector.load %arg5[%c0_16, %c0_17, %c0_18] : memref<1x3x1xf32, #tpu.memory_space<vmem>>, vector<1x3x1xf32>
    %34 = vector.shape_cast %33 : vector<1x3x1xf32> to vector<3x1xf32>
    %35 = vector.shape_cast %32 : vector<3x1xf32> to vector<1x3x1xf32>
    tpu.vector_store %arg5[%c0_16, %c0_17, %c0_18], %35 {strides = array<i32>} : memref<1x3x1xf32, #tpu.memory_space<vmem>>, vector<1x3x1xf32>,
    %c0_19 = arith.constant 0 : index
    %c0_20 = arith.constant 0 : index
    %c0_21 = arith.constant 0 : index
    %36 = vector.load %arg6[%c0_19, %c0_20, %c0_21] : memref<1x3x1xf32, #tpu.memory_space<vmem>>, vector<1x3x1xf32>
    %37 = vector.shape_cast %36 : vector<1x3x1xf32> to vector<3x1xf32>
    %cst_22 = arith.constant dense<0.000000e+00> : vector<3xf32>
    %38 = vector.multi_reduction <add>, %18, %cst_22 [1] : vector<3x128xf32> to vector<3xf32>
    %39 = vector.shape_cast %38 : vector<3xf32> to vector<3x1xf32>
    %40 = arith.addf %37, %39 : vector<3x1xf32>
    %c0_23 = arith.constant 0 : index
    %c0_24 = arith.constant 0 : index
    %c0_25 = arith.constant 0 : index
    %41 = vector.load %arg6[%c0_23, %c0_24, %c0_25] : memref<1x3x1xf32, #tpu.memory_space<vmem>>, vector<1x3x1xf32>
    %42 = vector.shape_cast %41 : vector<1x3x1xf32> to vector<3x1xf32>
    %43 = vector.shape_cast %40 : vector<3x1xf32> to vector<1x3x1xf32>
    tpu.vector_store %arg6[%c0_23, %c0_24, %c0_25], %43 {strides = array<i32>} : memref<1x3x1xf32, #tpu.memory_space<vmem>>, vector<1x3x1xf32>,
    return
  }
  func.func @transform_0(%arg0: i32, %arg1: i32) -> (i32, i32) {
    %c2_i32 = arith.constant 2 : i32
    %0 = arith.muli %arg0, %c2_i32 : i32
    %1 = arith.addi %0, %arg1 : i32
    %c0_i32 = arith.constant 0 : i32
    %c0_i32_0 = arith.constant 0 : i32
    return %c0_i32, %1 : i32, i32
  }
  func.func @transform_1(%arg0: i32, %arg1: i32) -> (i32, i32) {
    %c2_i32 = arith.constant 2 : i32
    %0 = arith.muli %arg0, %c2_i32 : i32
    %1 = arith.addi %0, %arg1 : i32
    %c0_i32 = arith.constant 0 : i32
    %c0_i32_0 = arith.constant 0 : i32
    return %c0_i32, %1 : i32, i32
  }
  func.func @transform_2(%arg0: i32, %arg1: i32) -> (i32, i32, i32) {
    %c0_i32 = arith.constant 0 : i32
    %c0_i32_0 = arith.constant 0 : i32
    %c0_i32_1 = arith.constant 0 : i32
    return %arg0, %c0_i32, %c0_i32_0 : i32, i32, i32
  }
  func.func @transform_3(%arg0: i32, %arg1: i32) -> (i32, i32, i32) {
    %c0_i32 = arith.constant 0 : i32
    %c0_i32_0 = arith.constant 0 : i32
    %c0_i32_1 = arith.constant 0 : i32
    return %arg0, %c0_i32, %c0_i32_0 : i32, i32, i32
  }
  func.func @transform_4(%arg0: i32, %arg1: i32) -> (i32, i32, i32) {
    %c0_i32 = arith.constant 0 : i32
    %c0_i32_0 = arith.constant 0 : i32
    %c0_i32_1 = arith.constant 0 : i32
    return %arg0, %c0_i32, %c0_i32_0 : i32, i32, i32
  }
}

</mosaic_0001>

<bundles_post_ra>
// kernel: f1_loss.1
= control target key start
LH: loop header
LB: loop body
LE: loop exit
PB: predicated region body
PF: predicated region fallthrough
CT: control target
= control target key end

     0   :  { %s595_s15 = smov 0   ;;  %s597_s16 = smov 0   ;;  %s679_s0 = inlined_call_operand.vmem [shape: f32[3,512], index: 0, kind: input, shape index: {}]   ;;  %s680_s1 = inlined_call_operand.vmem [shape: s32[1,512], index: 1, kind: input, shape index: {}]   ;;  %s681_s2 = inlined_call_operand.vmem [shape: f32[2,3,1], index: 2, kind: output, shape index: {0}]   ;;  %s682_s3 = inlined_call_operand.vmem [shape: f32[2,3,1], index: 3, kind: output, shape index: {1}]   ;;  %s683_s4 = inlined_call_operand.vmem [shape: f32[2,3,1], index: 4, kind: output, shape index: {2}]  }
   0x1   :  { %s599_s17 = smov 0   ;;  %s601_s18 = smov 0  }
   0x2   :  { %s603_s19 = smov 0  }
   0x3 LB: > { %s24_s20 = sadd.s32 1, %s558_s17  ;;  %s27_s21 = sadd.s32 1, %s562_s18  ;;  %s566_s19 = sphi %s603_s19, %s15_s19   ;;  %s562_s18 = sphi %s601_s18, %s687_s18   ;;  %s558_s17 = sphi %s599_s17, %s686_s17   ;;  %s554_s16 = sphi %s597_s16, %s685_s16   ;;  %s550_s15 = sphi %s595_s15, %s684_s15  }
   0x4   : > { %p25_p0 = scmp.ge.s32.totalorder %s24_s20, 2  ;;  %p470_p1 = scmp.ge.s32.totalorder %s566_s19, 1 }
   0x5   : > { %p202_p2 = scmp.lt.s32.totalorder %s566_s19, 5 }
   0x6   : > { %s689_s20 = smov (%p25_p0, %s24_s20), 0  ;;  %s691_s21 = smov (!%p25_p0, %s27_s21), %s562_s18 }
   0x7   : > { %p203_p3 = pnand %p470_p1, %p202_p2  ;;  %p29_p4 = scmp.ge.s32.totalorder %s691_s21, 2 }
   0x8   : > { %s471_s22 = sshll.u32 (!%p203_p3), %s554_s16, 1  ;;  %p256_p5 = scmp.lt.s32.totalorder (!%p203_p3), %s554_s16, 1 }
   0x9   : > { %s693_s21 = smov (%p29_p4, %s691_s21), 0  ;;  %206 = sbr.rel (%p203_p3) target bundleno = 234 (0xea), region = 28 }
   0xa   : > { %s242_s23 = sadd.s32 (!%p203_p3), %s550_s15, %s471_s22  ;;  %p477_p7 = scmp.ne.s32.totalorder (!%p203_p3), %s550_s15, 0 }
   0xb   : > { %p243_p6 = scmp.lt.s32.totalorder (!%p203_p3), %s242_s23, 3 }
  0x10   : > { %s695_s16 = smov (!%p256_p5, %s554_s16), 1  ;;  %s697_s23 = smov (!%p243_p6, %s242_s23), 3 }
  0x11   : > { %s474_s24 = sshll.u32 %s695_s16, 2  ;;  %s472_s25 = sshll.u32 %s697_s23, 2  ;;  %vm272_vm0 = vcmask (!%p477_p7), 2048   ;;  %v568_v0 = vmov (!%p477_p7), 0.0  }
  0x12   : > { %s253_s28 = scalar_lea.vmem %s680_s1, %s697_s23  ;;  %s246_s5 = scalar_lea.vmem %s679_s0, %s472_s25 }
  0x13   : > { %s637_s8 = scalar_lea.vmem %s681_s2, %s474_s24  ;;  %s642_s11 = scalar_lea.vmem %s682_s3, %s474_s24 }
  0x14   : > { %s647_s14 = scalar_lea.vmem %s683_s4, %s474_s24  ;;  %271 = sbr.rel (%p477_p7) target bundleno = 27 (0x1b), region = 32  ;;  %273 = vst.msk [vmem:[%s637_s8] sm:$0x7] (!%p477_p7), %vm272_vm0, %v568_v0  ;;  %274 = vst.msk [vmem:[%s642_s11] sm:$0x7] (!%p477_p7), %vm272_vm0, %v568_v0 }
  0x15   : > { %275 = vst.msk [vmem:[%s647_s14] sm:$0x7] (!%p477_p7), %vm272_vm0, %v568_v0 }
  0x1b PF: > { %v276_v1 = vld [vmem:[%s246_s5] sm:$0x7]  ;;  %vm277_vm1 = vcmask 1042432   ;;  %v298_v2 = vlaneseq  ;;  %v569_v8 = vmov 0.0   ;;  %vm313_vm3 = vcmask 2048  }
  0x1c   : > { %v278_v3 = vsel %vm277_vm1, %v276_v1, -inf  ;;  %v478_v4 = vld [vmem:[%s253_s28] ss:$0 sm:$0xff] }
  0x1d   : > { %v279_v5 = vrot.slane %v278_v3, 4  ;;  %v299_v6 = vshrl.u32 %v298_v2, 7  ;;  %v321_v30 = vld [vmem:[%s647_s14] sm:$0x7] }
  0x1e   : > { %v307_v33 = vld [vmem:[%s637_s8] sm:$0x7] }
  0x1f   : > { %v280_v7 = vmax.f32 %v278_v3, %v279_v5  ;;  %vm304_vm2 = vcmp.eq.s32.totalorder %v299_v6, %v478_v4  ;;  %v315_v36 = vld [vmem:[%s642_s11] sm:$0x7] }
  0x20   : > { %v479_v9 = vsel %vm304_vm2, 1.0, %v569_v8 }
  0x21   : > { %v281_v10 = vrot.slane %v280_v7, 2  ;;  %v322_v11 = vsel %vm277_vm1, %v479_v9, 0.0 }
  0x22   : > { %323 = vadd.xlane.f32.xlu1 %v322_v11 }
  0x23   : > { %v282_v12 = vmax.f32 %v280_v7, %v281_v10 }
  0x25   : > { %v283_v13 = vrot.slane %v282_v12, 1 }
  0x27   : > { %v284_v14 = vmax.f32 %v282_v12, %v283_v13 }
  0x29   : > { %v285_v15 = vsub.f32 %v276_v1, %v284_v14 }
  0x2b   : > { %v286_v16 = vmul.f32 1.442695, %v285_v15 }
  0x2d   : > { %524 = vpow2.f32 %v286_v16 }
  0x37   : > { %v525_v17 = vpop.eup %524 }
  0x38   : > { %v288_v18 = vsel %vm277_vm1, %v525_v17, 0.0 }
  0x39   : > { %v289_v19 = vrot.slane %v288_v18, 4 }
  0x3b   : > { %v290_v20 = vadd.f32 %v289_v19, %v288_v18 }
  0x3d   : > { %v291_v21 = vrot.slane %v290_v20, 2 }
  0x3f   : > { %v292_v22 = vadd.f32 %v291_v21, %v290_v20 }
  0x41   : > { %v293_v23 = vrot.slane %v292_v22, 1 }
  0x43   : > { %v294_v24 = vadd.f32 %v293_v23, %v292_v22 }
  0x45   : > { %526 = vrcp.f32 %v294_v24 }
  0x4f   : > { %v527_v25 = vpop.eup %526 }
  0x50   : > { %v296_v26 = vmul.f32 %v527_v25, %v525_v17 }
  0x52   : > { %v308_v27 = vmul.f32 %v479_v9, %v296_v26  ;;  %v316_v29 = vsel %vm277_vm1, %v296_v26, 0.0 }
  0x54   : > { %v309_v28 = vsel %vm277_vm1, %v308_v27, 0.0 }
  0x55   : > { %310 = vadd.xlane.f32.xlu0 %v309_v28 }
  0x59   : > { %317 = vadd.xlane.f32.xlu0 %v316_v29 }
  0xaf   : > { %v324_v31 = vpop.xlane.xlu1 %323 }
  0xb0   : > { %v325_v32 = vadd.f32 %v324_v31, %v321_v30 }
  0xb2   : > { %326 = vst.msk [vmem:[%s647_s14] sm:$0x7] %vm313_vm3, %v325_v32 }
  0xe2   : > { %v311_v34 = vpop.xlane.xlu0 %310 }
  0xe3   : > { %v312_v35 = vadd.f32 %v311_v34, %v307_v33 }
  0xe5   : > { %314 = vst.msk [vmem:[%s637_s8] sm:$0x7] %vm313_vm3, %v312_v35 }
  0xe6   : > { %v318_v37 = vpop.xlane.xlu0 %317 }
  0xe7   : > { %v319_v38 = vadd.f32 %v318_v37, %v315_v36 }
  0xe9   : > { %320 = vst.msk [vmem:[%s642_s11] sm:$0x7] %vm313_vm3, %v319_v38 }
  0xea PF: > { %s15_s19 = sadd.s32 1, %s566_s19   ;;  %s684_s15 = smov %s558_s17 }
  0xeb   : > { %p12_p8 = scmp.ge.s32.totalorder %s15_s19, 6   ;;  %s685_s16 = smov %s562_s18 }
  0xec   : > { %s686_s17 = smov %s689_s20  ;;  %s687_s18 = smov %s693_s21 }
  0xed   :  { %14 = sbr.rel (!%p12_p8) target bundleno = 3 (0x3), region = 89 }

</bundles_post_ra>
